<compile_context>
chip_gen: v5e
topology: v5e:2x2
jax: 0.10.0
libtpu: 0.0.40
codegen_flags: <defaults>
</compile_context>

<pallas_src>
import jax
import jax.numpy as jnp
from jax.experimental import pallas as pl
from jax.experimental.pallas import tpu as pltpu


def _round_up(x, m):
    return (x + m - 1) // m * m


# --------------------------------------------------------------------------------------
# Preamble kernel: msg = (rbf @ W_rbf^T) * m, one edge tile per step, stored compute_dtype.
# --------------------------------------------------------------------------------------
def _msg_kernel(rbf_ref, m_ref, w_rbf_ref, msg_ref):
    cdt = w_rbf_ref.dtype
    e = jnp.dot(rbf_ref[...].astype(cdt), w_rbf_ref[...],
                preferred_element_type=jnp.float32)
    msg_ref[...] = (e * m_ref[...].astype(jnp.float32)).astype(msg_ref.dtype)


# --------------------------------------------------------------------------------------
# Main kernel: one-hot scatter-add over this atom tile's edge blocks, then dense stack.
# --------------------------------------------------------------------------------------
def _scatter_dense_kernel(blk_tbl_ref, num_blk_ref,            # scalar prefetch (SMEM)
                          idx_ref, msg_ref,                     # streamed per edge block
                          dense_w_ref, dense_b_ref, w_out_ref,  # resident weights
                          out_ref,                              # [tn, n_out_pad] f32
                          acc_ref):                             # [tn, D] f32 scratch
    cdt = msg_ref.dtype
    tn = acc_ref.shape[0]
    n_dense = dense_w_ref.shape[0]

    i = pl.program_id(0)            # atom tile            ("parallel")
    j = pl.program_id(1)            # local edge-block step ("arbitrary" reduction)

    @pl.when(j == 0)
    def _init():
        acc_ref[...] = jnp.zeros_like(acc_ref)

    @pl.when(j < num_blk_ref[i])
    def _scatter():
        # one-hot: (tn, 1) row ids vs (1, te) destination ids -> (tn, te); 0/1 exact in bf16
        rows = i * tn + jax.lax.broadcasted_iota(jnp.int32, (tn, 1), 0)
        seg = (rows == idx_ref[...]).astype(cdt)
        acc_ref[...] += jnp.dot(seg, msg_ref[...],
                                preferred_element_type=jnp.float32)

    @pl.when(j == pl.num_programs(1) - 1)
    def _finalize():
        atom = acc_ref[...]
        for l in range(n_dense):                                # small static unroll
            h = jnp.dot(atom.astype(cdt), dense_w_ref[l],
                        preferred_element_type=jnp.float32) + dense_b_ref[l][None, :]
            atom = h * jax.nn.sigmoid(h)                        # swish, kept f32
        out_ref[...] = jnp.dot(atom.astype(cdt), w_out_ref[...],
                               preferred_element_type=jnp.float32)


def output_layer_forward(m_ji, rbf_ji, atom_edge_index, params, n_atoms, *,
                         edge_tile=1024, atom_tile=256,
                         compute_dtype=jnp.bfloat16, max_edge_blocks=None):
    """Pallas forward of OutputLayer (concrete_dropout=False). Returns (out, regularization)."""
    E, D = m_ji.shape
    R = rbf_ji.shape[-1]
    n_dense = params["dense_w"].shape[0]
    n_out = params["w_out"].shape[0]
    n_out_pad = _round_up(n_out, 128)
    wb = jnp.dtype(compute_dtype).itemsize

    # ---- lane/sublane aligned tile sizes & padding -------------------------------------
    te = _round_up(min(edge_tile, _round_up(E, 128)), 128)      # edge tile, multiple of 128
    e_pad = _round_up(E, te)
    n_et = e_pad // te
    tn = _round_up(min(atom_tile, _round_up(n_atoms, 16)), 16)  # atom tile, multiple of 16
    n_pad = _round_up(n_atoms, tn)
    n_at = n_pad // tn

    # ---- sort edges by destination atom so each atom tile owns a contiguous edge range --
    dst = atom_edge_index[1, :].astype(jnp.int32)
    order = jnp.argsort(dst)
    dst_s = dst[order]
    m_s = jnp.take(m_ji.astype(jnp.float32), order, axis=0)
    rbf_s = jnp.take(rbf_ji.astype(jnp.float32), order, axis=0)

    # padded edges point at an out-of-range atom id (n_pad) -> never matched by the one-hot
    idx_p = jnp.pad(dst_s, (0, e_pad - E), constant_values=n_pad).reshape(1, e_pad)
    m_p = jnp.pad(m_s, ((0, e_pad - E), (0, 0)))
    rbf_p = jnp.pad(rbf_s, ((0, e_pad - E), (0, 0)))

    # per-atom-tile edge ranges -> first edge block and number of edge blocks
    bounds = jnp.arange(n_at + 1, dtype=jnp.int32) * tn
    starts = jnp.searchsorted(dst_s, bounds, side="left").astype(jnp.int32)
    start_i, end_i = starts[:-1], starts[1:]
    first_blk = jnp.clip(start_i // te, 0, n_et - 1)
    num_blk = jnp.where(end_i > start_i,
                        (end_i + te - 1) // te - start_i // te,
                        0).astype(jnp.int32)

    if max_edge_blocks is None:
        # data-dependent grid extent -> needs a concrete value (wrapper runs eagerly);
        # pass max_edge_blocks explicitly to keep the wrapper jit-compatible.
        max_blocks = max(int(jax.device_get(jnp.max(num_blk))), 1)
    else:
        max_blocks = max(int(max_edge_blocks), 1)

    # per-(atom tile, step) global edge-block index; steps past num_blk clamp to the
    # previous block (Pallas skips the repeated DMA) and compute is skipped in-kernel.
    j_ar = jnp.arange(max_blocks, dtype=jnp.int32)
    blk_tbl = first_blk[:, None] + jnp.minimum(j_ar[None, :],
                                               jnp.maximum(num_blk - 1, 0)[:, None])
    blk_tbl = jnp.clip(blk_tbl, 0, n_et - 1).astype(jnp.int32)

    # ---- pre-transposed (and optionally bf16-cast) weights: no in-kernel transposes -----
    w_rbf_t = params["w_rbf"].T.astype(compute_dtype)                           # [R, D]
    dense_w_t = jnp.swapaxes(params["dense_w"], -1, -2).astype(compute_dtype)   # [n_dense, D, D]
    dense_b = params["dense_b"].astype(jnp.float32)                             # [n_dense, D]
    w_out_t = jnp.pad(params["w_out"].T.astype(compute_dtype),                  # [D, n_out_pad]
                      ((0, 0), (0, n_out_pad - n_out)))

    # ---- preamble: msg = (rbf @ W_rbf^T) * m, single pass over the sorted edge stream ----
    vmem_pre = 2 * te * (4 * R + 4 * D + wb * D) + 2 * R * D * wb
    msg_sorted = pl.pallas_call(
        _msg_kernel,
        out_shape=jax.ShapeDtypeStruct((e_pad, D), compute_dtype),
        grid=(n_et,),
        in_specs=[
            pl.BlockSpec((te, R), lambda j: (j, 0)),            # sorted rbf tile
            pl.BlockSpec((te, D), lambda j: (j, 0)),            # sorted m tile
            pl.BlockSpec((R, D), lambda j: (0, 0)),             # W_rbf^T (resident)
        ],
        out_specs=pl.BlockSpec((te, D), lambda j: (j, 0)),
        compiler_params=pltpu.CompilerParams(
            dimension_semantics=("parallel",),
            vmem_limit_bytes=int(min(max(4 * vmem_pre, 8 << 20), 48 << 20))),
        cost_estimate=pl.CostEstimate(
            flops=int(2 * e_pad * R * D + e_pad * D),
            transcendentals=0,
            bytes_accessed=int(e_pad * (4 * R + 4 * D + wb * D) + R * D * wb)),
    )(rbf_p, m_p, w_rbf_t)

    # ---- main kernel: sorted one-hot scatter + dense stack + (lane-padded) output -------
    n_blocks_est = n_et + n_at                 # each block ~once + boundary duplicates
    flops = int(2 * n_blocks_est * tn * te * D
                + 2 * n_dense * n_pad * D * D
                + 2 * n_pad * D * n_out_pad)
    bytes_accessed = int(n_blocks_est * te * (wb * D + 4)
                         + (n_dense * D * D + D * n_out_pad) * wb
                         + n_dense * D * 4
                         + n_pad * n_out_pad * 4)
    vmem_main = (2 * te * (wb * D + 4)                                   # streamed msg + idx
                 + 2 * ((n_dense * D * D + D * n_out_pad) * wb + n_dense * D * 4)  # weights
                 + tn * D * 4                                            # accumulator scratch
                 + tn * te * wb                                          # one-hot intermediate
                 + 2 * tn * n_out_pad * 4)                               # output
    vmem_limit = int(min(max(4 * vmem_main, 8 << 20), 48 << 20))

    grid_spec = pltpu.PrefetchScalarGridSpec(
        num_scalar_prefetch=2,
        grid=(n_at, max_blocks),
        in_specs=[
            pl.BlockSpec((1, te), lambda i, j, tbl, nb: (0, tbl[i, j])),   # dst indices
            pl.BlockSpec((te, D), lambda i, j, tbl, nb: (tbl[i, j], 0)),   # msg tile
            pl.BlockSpec((n_dense, D, D), lambda i, j, tbl, nb: (0, 0, 0)),  # dense W^T
            pl.BlockSpec((n_dense, D), lambda i, j, tbl, nb: (0, 0)),        # dense biases
            pl.BlockSpec((D, n_out_pad), lambda i, j, tbl, nb: (0, 0)),      # W_out^T (padded)
        ],
        out_specs=pl.BlockSpec((tn, n_out_pad), lambda i, j, tbl, nb: (i, 0)),
        scratch_shapes=[pltpu.VMEM((tn, D), jnp.float32)],
    )

    out = pl.pallas_call(
        _scatter_dense_kernel,
        out_shape=jax.ShapeDtypeStruct((n_pad, n_out_pad), jnp.float32),
        grid_spec=grid_spec,
        compiler_params=pltpu.CompilerParams(
            dimension_semantics=("parallel", "arbitrary"),
            vmem_limit_bytes=vmem_limit),
        cost_estimate=pl.CostEstimate(
            flops=flops,
            transcendentals=int(n_dense * n_pad * D),
            bytes_accessed=bytes_accessed),
    )(blk_tbl, num_blk, idx_p, msg_sorted, dense_w_t, dense_b, w_out_t)

    regularization = 0.0   # concrete_dropout=False path
    return out[:n_atoms, :n_out], regularization


def reference_forward(m_ji, rbf_ji, atom_edge_index, params, n_atoms):
    """Pure-JAX reference of the same forward pass (for correctness check)."""
    e = rbf_ji @ params["w_rbf"].T
    msg = e * m_ji
    atom = jax.ops.segment_sum(msg, atom_edge_index[1, :], num_segments=n_atoms)
    for i in range(params["dense_w"].shape[0]):
        h = atom @ params["dense_w"][i].T + params["dense_b"][i]
        atom = h * jax.nn.sigmoid(h)
    return atom @ params["w_out"].T, 0.0


if __name__ == "__main__":
    # Small but realistic-layout sizes: D=128 (lane-aligned embedding dim), E=300 edges,
    # 20 atoms, rbf_dim=16, 3 dense layers, 2 outputs.
    E = 300
    N_ATOMS = 20
    R = 16
    D = 128
    O = 2
    N_DENSE = 3

    key = jax.random.PRNGKey(0)
    k_m, k_rbf, k_idx, k_wrbf, k_dw, k_db, k_wo = jax.random.split(key, 7)

    m_ji = jax.random.normal(k_m, (E, D), dtype=jnp.float32)
    rbf_ji = jax.random.normal(k_rbf, (E, R), dtype=jnp.float32)
    dst = jax.random.randint(k_idx, (E,), 0, N_ATOMS, dtype=jnp.int32)
    atom_edge_index = jnp.stack([jnp.zeros_like(dst), dst], axis=0)   # only row 1 is used

    params = {
        "w_rbf": 0.1 * jax.random.normal(k_wrbf, (D, R), dtype=jnp.float32),
        "dense_w": 0.1 * jax.random.normal(k_dw, (N_DENSE, D, D), dtype=jnp.float32),
        "dense_b": 0.1 * jax.random.normal(k_db, (N_DENSE, D), dtype=jnp.float32),
        # The module zero-initializes out_dense.weight; a RANDOM weight is used here so the
        # correctness check actually exercises the scatter + dense path.
        "w_out": 0.1 * jax.random.normal(k_wo, (O, D), dtype=jnp.float32),
    }

    ref_out, _ = reference_forward(m_ji, rbf_ji, atom_edge_index, params, N_ATOMS)
    ref_out = jax.block_until_ready(ref_out)
    ref_scale = float(jnp.max(jnp.abs(ref_out))) + 1.0

    # f32 path with small tiles -> exercises multiple atom tiles, the sorted-edge block
    # table (including a shared boundary block and clamped/skipped steps).
    out_f32, reg = output_layer_forward(
        m_ji, rbf_ji, atom_edge_index, params, N_ATOMS,
        edge_tile=128, atom_tile=16, compute_dtype=jnp.float32)
    out_f32 = jax.block_until_ready(out_f32)
    assert out_f32.shape == (N_ATOMS, O)
    assert reg == 0.0
    err_f32 = float(jnp.max(jnp.abs(out_f32 - ref_out)))
    assert err_f32 < 3e-2 * ref_scale, ("f32 mismatch", err_f32, ref_scale)

    # bf16 operands / f32 accumulation with the default (large) tile sizes.
    out_bf16, _ = output_layer_forward(
        m_ji, rbf_ji, atom_edge_index, params, N_ATOMS, compute_dtype=jnp.bfloat16)
    out_bf16 = jax.block_until_ready(out_bf16)
    assert out_bf16.shape == (N_ATOMS, O)
    err_bf16 = float(jnp.max(jnp.abs(out_bf16 - ref_out)))
    assert err_bf16 < 1e-1 * ref_scale, ("bf16 mismatch", err_bf16, ref_scale)

    print("KERNEL_OK")
</pallas_src>

<mosaic_0001>
module attributes {stable_mosaic.version = 11 : i64} {
  func.func @_msg_kernel(%arg0: i32, %arg1: memref<128x16xf32, #tpu.memory_space<vmem>>, %arg2: memref<128x128xf32, #tpu.memory_space<vmem>>, %arg3: memref<16x128xf32, #tpu.memory_space<vmem>>, %arg4: memref<128x128xf32, #tpu.memory_space<vmem>>) attributes {dimension_semantics = [#tpu.dimension_semantics<parallel>], iteration_bounds = array<i64: 3>, scalar_prefetch = 0 : i64, scratch_operands = 0 : i64, tpu.core_type = #tpu.core_type<tc>, window_params = [{transform_indices = @transform_0, window_bounds = array<i64: 128, 16>}, {transform_indices = @transform_1, window_bounds = array<i64: 128, 128>}, {pipeline_mode = #tpu.pipeline_mode<synchronous>, transform_indices = @transform_2, window_bounds = array<i64: 16, 128>}, {transform_indices = @transform_3, window_bounds = array<i64: 128, 128>}]} {
    %c0 = arith.constant 0 : index
    %c0_0 = arith.constant 0 : index
    %0 = vector.load %arg1[%c0, %c0_0] : memref<128x16xf32, #tpu.memory_space<vmem>>, vector<128x16xf32>
    %c0_1 = arith.constant 0 : index
    %c0_2 = arith.constant 0 : index
    %1 = vector.load %arg3[%c0_1, %c0_2] : memref<16x128xf32, #tpu.memory_space<vmem>>, vector<16x128xf32>
    %cst = arith.constant dense<0.000000e+00> : vector<128x128xf32>
    %2 = tpu.matmul %0, %1, %cst {dimension_numbers = #tpu.dot_dimension_numbers<[1], [0], [0], [1], [0, 0, 1, 1], [], []>} : vector<128x16xf32>, vector<16x128xf32>, vector<128x128xf32> -> vector<128x128xf32>
    %c0_3 = arith.constant 0 : index
    %c0_4 = arith.constant 0 : index
    %3 = vector.load %arg2[%c0_3, %c0_4] : memref<128x128xf32, #tpu.memory_space<vmem>>, vector<128x128xf32>
    %4 = arith.mulf %2, %3 : vector<128x128xf32>
    %c0_5 = arith.constant 0 : index
    %c0_6 = arith.constant 0 : index
    %5 = vector.load %arg4[%c0_5, %c0_6] : memref<128x128xf32, #tpu.memory_space<vmem>>, vector<128x128xf32>
    tpu.vector_store %arg4[%c0_5, %c0_6], %4 {strides = array<i32>} : memref<128x128xf32, #tpu.memory_space<vmem>>, vector<128x128xf32>,
    return
  }
  func.func @transform_0(%arg0: i32) -> (i32, i32) {
    %c0_i32 = arith.constant 0 : i32
    %c0_i32_0 = arith.constant 0 : i32
    return %arg0, %c0_i32 : i32, i32
  }
  func.func @transform_1(%arg0: i32) -> (i32, i32) {
    %c0_i32 = arith.constant 0 : i32
    %c0_i32_0 = arith.constant 0 : i32
    return %arg0, %c0_i32 : i32, i32
  }
  func.func @transform_2(%arg0: i32) -> (i32, i32) {
    %c0_i32 = arith.constant 0 : i32
    %c0_i32_0 = arith.constant 0 : i32
    %c0_i32_1 = arith.constant 0 : i32
    return %c0_i32, %c0_i32_0 : i32, i32
  }
  func.func @transform_3(%arg0: i32) -> (i32, i32) {
    %c0_i32 = arith.constant 0 : i32
    %c0_i32_0 = arith.constant 0 : i32
    return %arg0, %c0_i32 : i32, i32
  }
}

</mosaic_0001>

<bundles_post_ra>
// kernel: tpu_custom_call.1
= control target key start
LH: loop header
LB: loop body
LE: loop exit
PB: predicated region body
PF: predicated region fallthrough
CT: control target
= control target key end

     0   :  { %8 = vsyncpa [#allocation3], 0  ;;  %s785_s0 = inlined_call_operand.vmem [shape: f32[384,16], index: 0, kind: input, shape index: {}]   ;;  %s786_s1 = inlined_call_operand.vmem [shape: f32[384,128], index: 1, kind: input, shape index: {}]   ;;  %s787_s2 = inlined_call_operand.vmem [shape: f32[16,128], index: 2, kind: input, shape index: {}]   ;;  %s788_s3 = inlined_call_operand.hbm [shape: f32[384,128], index: 3, kind: output, shape index: {}]  }
   0x1   :  { %10 = vsyncpa [#allocation3 + $0x1], 0  ;;  %s628_s12 = smov 0   ;;  %s630_s13 = smov 0  }
   0x2   :  { %s632_s14 = smov 0   ;;  %s634_s15 = smov 0  }
   0x3 LB: > { %s649_s16 = sadd.s32 4294967295, %s604_s15   ;;  %s464_s17 = sadd.s32 4294967294, %s604_s15   ;;  %s604_s15 = sphi %s634_s15, %s794_s15   ;;  %s600_s14 = sphi %s632_s14, %s793_s14   ;;  %s596_s13 = sphi %s630_s13, %s792_s13   ;;  %s592_s12 = sphi %s628_s12, %s791_s12  }
   0x4   : > { %s653_s18 = sadd.s32 1, %s604_s15   ;;  %s96_s19 = sadd.s32 1, %s600_s14 }
   0x5   : > { %s93_s20 = ssub.s32 %s604_s15, %s653_s18  ;;  %p106_p0 = scmp.ne.s32.totalorder %s600_s14, %s596_s13 }
   0x6   : > { %p94_p1 = scmp.eq.s32.totalorder %s93_s20, 0  ;;  %p107_p2 = scmp.eq.s32.totalorder %s649_s16, 2 }
   0x7   : > { %p112_p3 = scmp.ne.s32.totalorder %s596_s13, %s592_s12  ;;  %p113_p4 = scmp.eq.s32.totalorder %s464_s17, 2 }
   0x8   : > { %s664_s21 = scalar_select %p94_p1, %s600_s14, %s96_s19  }
   0x9   : > { %p666_p5 = por %p107_p2, %p106_p0  ;;  %p670_p6 = por %p113_p4, %p112_p3 }
   0xa   : > { %p467_p7 = scmp.ge.s32.totalorder %s604_s15, 1  ;;  %p152_p8 = scmp.lt.s32.totalorder %s604_s15, 4 }
   0xc   : > { %p153_p9 = pnand %p467_p7, %p152_p8 }
   0xd   : > { %s469_s28 = sshll.u32 (!%p153_p9), %s649_s16, 4  ;;  %s178_s6 = sand.u32 (!%p153_p9), 1, %s596_s13  }
   0xe   : > { %156 = sbr.rel (%p153_p9) target bundleno = 187 (0xbb), region = 32  ;;  %p182_p10 = scmp.lt.s32.totalorder (!%p153_p9), %s469_s28, 47 }
   0xf   : > { %s468_s10 = sshll.u32 (!%p153_p9), %s178_s6, 7  ;;  %s494_s17 = sshll.u32 (!%p153_p9), %s649_s16, 7 }
  0x10   : > { %s719_s11 = scalar_lea.vmem (!%p153_p9), [#allocation2], %s468_s10  ;;  %s386_s24 = scalar_lea.hbm (!%p153_p9), %s788_s3, %s494_s17 }
  0x11   : > { %s387_s16 = sshll.u32 (!%p153_p9), %s719_s11, 4  ;;  %s389_s25 = sshll.u32 (!%p153_p9), %s386_s24, 4  ;;  %s388_s16 = int_to_ptr.vmem [resolvable:$true] %s387_s16  ;;  %s390_s25 = int_to_ptr.hbm [resolvable:$true] %s389_s25 }
  0x12   : > { %s375_s26 = scalar_lea.sflag (!%p153_p9), [#allocation3], %s178_s6  ;;  %s556_s27 = sshra.s32 (!%p153_p9), %s390_s25, 4  ;;  %s557_s27 = int_to_ptr.hbm [resolvable:$true] %s556_s27 }
  0x13   : > { %v211_v0 = vld [vmem:[%s787_s2 + $0x8] sm:$0xff]  ;;  %v210_v1 = vld [vmem:[%s787_s2] sm:$0xff]  ;;  %s796_s28 = smov (!%p182_p10, %s469_s28), 47  ;;  %vm212_vm0 = vcmask 130048   ;;  %s562_s4 = scalar_lea.hbm %s788_s3, 384 }
  0x14   : > { %496 = vmatpush.msra.mxu2 %v211_v0  ;;  %497 = vmatpush.msra.mxu3 %v211_v0  ;;  %s470_s29 = sshll.u32 %s796_s28, 3  ;;  %s558_s28 = scalar_lea.hbm %s557_s27, 128 }
  0x15   : > { %275 = vmatpush.msra.mxu0 %v211_v0  ;;  %495 = vmatpush.msra.mxu1 %v211_v0  ;;  %s185_s5 = scalar_lea.vmem %s785_s0, %s470_s29  ;;  %s713_s9 = scalar_lea.vmem %s786_s1, %s470_s29 }
  0x16   : > { %499 = vmatpush.msra.mxu2 %v210_v1  ;;  %500 = vmatpush.msra.mxu3 %v210_v1  ;;  %v202_v2 = vld [vmem:[%s185_s5 + $0x40] sm:$0xff]  ;;  %v203_v6 = vld [vmem:[%s185_s5 + $0x48] sm:$0xff]  ;;  %v204_v10 = vld [vmem:[%s185_s5 + $0x50] sm:$0xff]  ;;  %p559_p11 = scmp.ne.s32.totalorder %s557_s27, %s558_s28  ;;  %p563_p0 = scmp.lt.s32.totalorder %s557_s27, %s788_s3 }
  0x17   : > { %276 = vmatpush.msra.mxu0 %v210_v1  ;;  %498 = vmatpush.msra.mxu1 %v210_v1  ;;  %v206_v3 = vld [vmem:[%s185_s5 + $0x60] sm:$0xff]  ;;  %v207_v7 = vld [vmem:[%s185_s5 + $0x68] sm:$0xff]  ;;  %v208_v11 = vld [vmem:[%s185_s5 + $0x70] sm:$0xff]  ;;  %p564_p1 = scmp.lt.s32.totalorder %s562_s4, %s558_s28 }
  0x18   : > { %v194_v4 = vld [vmem:[%s185_s5] sm:$0xff]  ;;  %481 = vmatmul.msk.f32.vlgmr.msra.gmra.mxu2 %vm212_vm0, %v202_v2  ;;  %485 = vmatmul.msk.f32.vlgmr.msra.gmra.mxu3 %vm212_vm0, %v206_v3  ;;  %v195_v8 = vld [vmem:[%s185_s5 + $0x8] sm:$0xff]  ;;  %v196_v12 = vld [vmem:[%s185_s5 + $0x10] sm:$0xff]  ;;  %p560_p12 = pnand %p559_p11, %p666_p5 }
  0x19   : > { %v198_v5 = vld [vmem:[%s185_s5 + $0x20] sm:$0xff]  ;;  %473 = vmatmul.msk.f32.vlgmr.msra.gmra.mxu0 %vm212_vm0, %v194_v4  ;;  %v199_v9 = vld [vmem:[%s185_s5 + $0x28] sm:$0xff]  ;;  %v200_v13 = vld [vmem:[%s185_s5 + $0x30] sm:$0xff]  ;;  %p565_p2 = por %p564_p1, %p563_p0 }
  0x1a   : > { %477 = vmatmul.msk.f32.vlgmr.msra.gmra.mxu1 %vm212_vm0, %v198_v5  ;;  %v205_v14 = vld [vmem:[%s185_s5 + $0x58] sm:$0xff]  ;;  %v326_v18 = vld [vmem:[%s713_s9] sm:$0xff]  ;;  %v327_v30 = vld [vmem:[%s713_s9 + $0x8] sm:$0xff]  ;;  %p561_p13 = pneg %p560_p12 }
  0x1b   : > { %v209_v15 = vld [vmem:[%s185_s5 + $0x78] sm:$0xff]  ;;  %v330_v19 = vld [vmem:[%s713_s9 + $0x20] sm:$0xff]  ;;  %v331_v31 = vld [vmem:[%s713_s9 + $0x28] sm:$0xff] }
  0x1c   : > { %v197_v16 = vld [vmem:[%s185_s5 + $0x18] sm:$0xff]  ;;  %v334_v24 = vld [vmem:[%s713_s9 + $0x40] sm:$0xff]  ;;  %v335_v36 = vld [vmem:[%s713_s9 + $0x48] sm:$0xff]  ;;  %p566_p3 = pnand %p565_p2, %p561_p13 }
  0x1d   : > { %v201_v17 = vld [vmem:[%s185_s5 + $0x38] sm:$0xff]  ;;  %v338_v25 = vld [vmem:[%s713_s9 + $0x60] sm:$0xff]  ;;  %v339_v37 = vld [vmem:[%s713_s9 + $0x68] sm:$0xff] }
  0x1e   : > { %v328_v42 = vld [vmem:[%s713_s9 + $0x10] sm:$0xff]  ;;  %v329_v54 = vld [vmem:[%s713_s9 + $0x18] sm:$0xff] }
  0x1f   : > { %v332_v43 = vld [vmem:[%s713_s9 + $0x30] sm:$0xff]  ;;  %v333_v55 = vld [vmem:[%s713_s9 + $0x38] sm:$0xff] }
  0x20   : > { %482 = vmatmul.msk.f32.gmra.mxu2 %vm212_vm0, %v203_v6  ;;  %486 = vmatmul.msk.f32.gmra.mxu3 %vm212_vm0, %v207_v7  ;;  %v336_v48 = vld [vmem:[%s713_s9 + $0x50] sm:$0xff]  ;;  %v337_v60 = vld [vmem:[%s713_s9 + $0x58] sm:$0xff] }
  0x21   : > { %474 = vmatmul.msk.f32.gmra.mxu0 %vm212_vm0, %v195_v8  ;;  %v340_v49 = vld [vmem:[%s713_s9 + $0x70] sm:$0xff]  ;;  %v341_v61 = vld [vmem:[%s713_s9 + $0x78] sm:$0xff] }
  0x22   : > { %478 = vmatmul.msk.f32.gmra.mxu1 %vm212_vm0, %v199_v9 }
  0x28   : > { %483 = vmatmul.msk.f32.gmra.mxu2 %vm212_vm0, %v204_v10  ;;  %487 = vmatmul.msk.f32.gmra.mxu3 %vm212_vm0, %v208_v11 }
  0x29   : > { %475 = vmatmul.msk.f32.gmra.mxu0 %vm212_vm0, %v196_v12 }
  0x2a   : > { %479 = vmatmul.msk.f32.gmra.mxu1 %vm212_vm0, %v200_v13 }
  0x30   : > { %484 = vmatmul.msk.f32.gmra.mxu2 %vm212_vm0, %v205_v14  ;;  %488 = vmatmul.msk.f32.gmra.mxu3 %vm212_vm0, %v209_v15 }
  0x31   : > { %476 = vmatmul.msk.f32.gmra.mxu0 %vm212_vm0, %v197_v16 }
  0x32   : > { %480 = vmatmul.msk.f32.gmra.mxu1 %vm212_vm0, %v201_v17 }
  0x96   : > { %v278_v20 = vpop.f32.mrf.mxu0 }
  0x97   : > { %v290_v21 = vpop.f32.mrf.mxu1  ;;  %v342_v22 = vmul.f32 %v326_v18, %v278_v20 }
  0x98   : > { %v346_v23 = vmul.f32 %v330_v19, %v290_v21 }
  0x99   : > { %358 = vst [vmem:[%s719_s11] sm:$0xff] %v342_v22 }
  0x9a   : > { %362 = vst [vmem:[%s719_s11 + $0x20] sm:$0xff] %v346_v23 }
  0x9b   : > { %v302_v26 = vpop.f32.mrf.mxu2  ;;  %v314_v27 = vpop.f32.mrf.mxu3 }
  0x9c   : > { %v350_v28 = vmul.f32 %v334_v24, %v302_v26  ;;  %v354_v29 = vmul.f32 %v338_v25, %v314_v27 }
  0x9e   : > { %366 = vst [vmem:[%s719_s11 + $0x40] sm:$0xff] %v350_v28  ;;  %v281_v32 = vpop.f32.mrf.mxu0 }
  0x9f   : > { %v293_v33 = vpop.f32.mrf.mxu1  ;;  %370 = vst [vmem:[%s719_s11 + $0x60] sm:$0xff] %v354_v29  ;;  %v343_v34 = vmul.f32 %v327_v30, %v281_v32 }
  0xa0   : > { %v347_v35 = vmul.f32 %v331_v31, %v293_v33 }
  0xa1   : > { %359 = vst [vmem:[%s719_s11 + $0x8] sm:$0xff] %v343_v34 }
  0xa2   : > { %363 = vst [vmem:[%s719_s11 + $0x28] sm:$0xff] %v347_v35 }
  0xa3   : > { %v305_v38 = vpop.f32.mrf.mxu2  ;;  %v317_v39 = vpop.f32.mrf.mxu3 }
  0xa4   : > { %v351_v40 = vmul.f32 %v335_v36, %v305_v38  ;;  %v355_v41 = vmul.f32 %v339_v37, %v317_v39 }
  0xa6   : > { %367 = vst [vmem:[%s719_s11 + $0x48] sm:$0xff] %v351_v40  ;;  %v284_v44 = vpop.f32.mrf.mxu0 }
  0xa7   : > { %v296_v45 = vpop.f32.mrf.mxu1  ;;  %371 = vst [vmem:[%s719_s11 + $0x68] sm:$0xff] %v355_v41  ;;  %v344_v46 = vmul.f32 %v328_v42, %v284_v44 }
  0xa8   : > { %v348_v47 = vmul.f32 %v332_v43, %v296_v45 }
  0xa9   : > { %360 = vst [vmem:[%s719_s11 + $0x10] sm:$0xff] %v344_v46 }
  0xaa   : > { %364 = vst [vmem:[%s719_s11 + $0x30] sm:$0xff] %v348_v47 }
  0xab   : > { %v308_v50 = vpop.f32.mrf.mxu2  ;;  %v320_v51 = vpop.f32.mrf.mxu3 }
  0xac   : > { %v352_v52 = vmul.f32 %v336_v48, %v308_v50  ;;  %v356_v53 = vmul.f32 %v340_v49, %v320_v51 }
  0xae   : > { %368 = vst [vmem:[%s719_s11 + $0x50] sm:$0xff] %v352_v52  ;;  %v287_v56 = vpop.f32.mrf.mxu0 }
  0xaf   : > { %v299_v57 = vpop.f32.mrf.mxu1  ;;  %372 = vst [vmem:[%s719_s11 + $0x70] sm:$0xff] %v356_v53  ;;  %v345_v58 = vmul.f32 %v329_v54, %v287_v56 }
  0xb0   : > { %v349_v59 = vmul.f32 %v333_v55, %v299_v57 }
  0xb1   : > { %361 = vst [vmem:[%s719_s11 + $0x18] sm:$0xff] %v345_v58 }
  0xb2   : > { %365 = vst [vmem:[%s719_s11 + $0x38] sm:$0xff] %v349_v59 }
  0xb3   : > { %v311_v62 = vpop.f32.mrf.mxu2  ;;  %v323_v63 = vpop.f32.mrf.mxu3 }
  0xb4   : > { %v353_v0 = vmul.f32 %v337_v60, %v311_v62  ;;  %v357_v1 = vmul.f32 %v341_v61, %v323_v63 }
  0xb6   : > { %369 = vst [vmem:[%s719_s11 + $0x58] sm:$0xff] %v353_v0 }
  0xb7   : > { %373 = vst [vmem:[%s719_s11 + $0x78] sm:$0xff] %v357_v1 }
  0xb8   : > { %569 = shalt.err (!%p566_p3)
}
  0xb9   : > { %s606_s6 = smov 128   ;;  %s607_s8 = smov 8  }
  0xba   : > { %501 = dma.vmem_to_hbm [thread:$0]  (%p666_p5), %s388_s16, 2048, %s390_s25, %s375_s26, %s606_s6, %s606_s6, %s607_s8  }
  0xbb PF: > { %p507_p4 = scmp.ge.s32.totalorder %s604_s15, 2  ;;  %s404_s9 = sand.u32 1, %s592_s12  }
  0xbc   : > { %s405_s10 = scalar_lea.sflag [#allocation3], %s404_s9 }
  0xbd   : > { %p504_p7 = pnand %p507_p4, %p670_p6 }
  0xbf   : > { %p505_p8 = pneg %p504_p7 }
  0xc1   : > { %587 = dma.done.wait (%p505_p8), %s405_s10, 2048  }
  0xc2   : > { %589 = vsyncadd (%p505_p8), %s405_s10, 4294965248  ;;  %p13_p9 = scmp.ge.s32.totalorder %s653_s18, 5   ;;  %s791_s12 = smov %s596_s13 }
  0xc3   : > { %s792_s13 = smov %s600_s14  ;;  %s793_s14 = smov %s664_s21 }
  0xc4   : > { %s794_s15 = smov %s653_s18  ;;  %15 = sbr.rel (!%p13_p9) target bundleno = 3 (0x3), region = 70 }
  0xc9   :  { %411 = vsyncpa [#allocation3], 1 }
  0xca   :  { %413 = vsyncpa [#allocation3 + $0x1], 1 }

</bundles_post_ra>
